<compile_context>
chip_gen: v7x
topology: tpu7x:2x2x1
jax: 0.10.0
libtpu: 0.0.40
codegen_flags: <defaults>
</compile_context>

<pallas_src>
import functools
import math

import jax
import jax.numpy as jnp
from jax.experimental import pallas as pl
from jax.experimental.pallas import tpu as pltpu


# ----------------------------------------------------------------------------
# Parameter / buffer init (glue, deterministic, mirrors nn.Module.__init__)
# ----------------------------------------------------------------------------
def make_positional_encoding_buffer(d_model: int, max_len: int = 1000) -> jnp.ndarray:
    """Builds the `pe` buffer of shape (max_len, 1, d_model), float32."""
    position = jnp.arange(max_len, dtype=jnp.float32)[:, None]          # (max_len, 1)
    div_term = jnp.exp(
        jnp.arange(0, d_model, 2, dtype=jnp.float32) * (-math.log(10000.0) / d_model)
    )                                                                    # (d_model/2,)
    pe = jnp.zeros((max_len, d_model), dtype=jnp.float32)
    pe = pe.at[:, 0::2].set(jnp.sin(position * div_term))
    pe = pe.at[:, 1::2].set(jnp.cos(position * div_term))
    return pe[:, None, :]                                                # (max_len, 1, d_model)


# ----------------------------------------------------------------------------
# Pallas kernel: out_tile = x_tile + lane-tiled(pe_tile)
# ----------------------------------------------------------------------------
def _pe_add_kernel(x_ref, pe_ref, o_ref, *, batch: int):
    # x_ref : (TILE_S, batch * d_model)   lane-dense slab of x
    # pe_ref: (TILE_S, d_model)           thin pe tile
    pe = pe_ref[...]
    if batch > 1:
        # Broadcast pe across the batch along the lane axis (matches the
        # (seq, batch*d_model) row-major flattening of x).  Cheap in-VMEM work.
        pe = jnp.concatenate([pe] * batch, axis=-1)
    o_ref[...] = x_ref[...] + pe


def _choose_tile_s(seq_len: int, bytes_per_row: int, target_bytes: int = 4 << 20) -> int:
    """Pick a sequence-tile so one (x-in + pe-in + out) block set is ~<= 4 MiB.

    Double-buffered by Pallas -> ~<= 8 MiB of VMEM, comfortably inside the
    scoped-VMEM defaults on v5e (16 MiB), v6e (32 MiB) and v7x (32 MiB).
    """
    tile = min(seq_len, max(1, target_bytes // max(bytes_per_row, 1)))
    if tile < seq_len:
        # Sublane-aligned tile; Pallas masks the ragged tail block.
        tile = max(8, (tile // 8) * 8)
        tile = min(tile, seq_len)
    return int(tile)


@jax.jit
def positional_encoding_forward(x: jnp.ndarray, pe: jnp.ndarray) -> jnp.ndarray:
    """x: (seq_len, batch, d_model); pe: (max_len, 1, d_model). Returns x + pe[:seq_len]."""
    S, B, D = x.shape

    # Glue (free / tiny): lane-dense view of x, thin pe slice cast to x.dtype.
    x2 = x.reshape(S, B * D)                       # row-major view, no data movement
    pe2 = pe[:S, 0, :].astype(x.dtype)             # (S, D)

    itemsize = jnp.dtype(x.dtype).itemsize
    bytes_per_row = (2 * B * D + D) * itemsize     # x-in + out + pe-in per seq position
    tile_s = _choose_tile_s(S, bytes_per_row)

    out2 = pl.pallas_call(
        functools.partial(_pe_add_kernel, batch=B),
        out_shape=jax.ShapeDtypeStruct((S, B * D), x.dtype),
        grid=(pl.cdiv(S, tile_s),),
        in_specs=[
            pl.BlockSpec((tile_s, B * D), lambda i: (i, 0)),   # x slab tile
            pl.BlockSpec((tile_s, D), lambda i: (i, 0)),       # thin pe tile
        ],
        out_specs=pl.BlockSpec((tile_s, B * D), lambda i: (i, 0)),
        compiler_params=pltpu.CompilerParams(
            dimension_semantics=("parallel",),     # shard rows across TCs on v7x
        ),
    )(x2, pe2)

    return out2.reshape(S, B, D)


# ----------------------------------------------------------------------------
# Demo / correctness check
# ----------------------------------------------------------------------------
if __name__ == "__main__":
    seq_len, batch, d_model = 8, 2, 32
    max_len = 1000

    key = jax.random.PRNGKey(0)
    x = jax.random.normal(key, (seq_len, batch, d_model), dtype=jnp.float32)

    pe = make_positional_encoding_buffer(d_model, max_len)

    out = positional_encoding_forward(x, pe)
    out = jax.block_until_ready(out)

    # Pure-JAX reference of the PyTorch forward: x + pe[:x.size(0), :]
    ref = x + pe[:seq_len]
    assert out.shape == (seq_len, batch, d_model)
    assert jnp.allclose(out, ref, atol=1e-6, rtol=1e-6)

    print("KERNEL_OK")
</pallas_src>

<mosaic_0001>
module attributes {stable_mosaic.version = 11 : i64} {
  func.func @_pe_add_kernel(%arg0: i32, %arg1: memref<8x64xf32, #tpu.memory_space<vmem>>, %arg2: memref<8x32xf32, #tpu.memory_space<vmem>>, %arg3: memref<8x64xf32, #tpu.memory_space<vmem>>) attributes {dimension_semantics = [#tpu.dimension_semantics<parallel>], iteration_bounds = array<i64: 1>, scalar_prefetch = 0 : i64, scratch_operands = 0 : i64, tpu.core_type = #tpu.core_type<tc>, window_params = [{transform_indices = @transform_0, window_bounds = array<i64: 8, 64>}, {transform_indices = @transform_1, window_bounds = array<i64: 8, 32>}, {transform_indices = @transform_2, window_bounds = array<i64: 8, 64>}]} {
    %c0 = arith.constant 0 : index
    %c0_0 = arith.constant 0 : index
    %0 = vector.load %arg2[%c0, %c0_0] : memref<8x32xf32, #tpu.memory_space<vmem>>, vector<8x32xf32>
    %1 = tpu.concatenate %0, %0 in 1 : vector<8x32xf32>, vector<8x32xf32> -> vector<8x64xf32>
    %c0_1 = arith.constant 0 : index
    %c0_2 = arith.constant 0 : index
    %2 = vector.load %arg1[%c0_1, %c0_2] : memref<8x64xf32, #tpu.memory_space<vmem>>, vector<8x64xf32>
    %3 = arith.addf %2, %1 : vector<8x64xf32>
    %c0_3 = arith.constant 0 : index
    %c0_4 = arith.constant 0 : index
    %4 = vector.load %arg3[%c0_3, %c0_4] : memref<8x64xf32, #tpu.memory_space<vmem>>, vector<8x64xf32>
    tpu.vector_store %arg3[%c0_3, %c0_4], %3 {strides = array<i32>} : memref<8x64xf32, #tpu.memory_space<vmem>>, vector<8x64xf32>,
    return
  }
  func.func @transform_0(%arg0: i32) -> (i32, i32) {
    %c0_i32 = arith.constant 0 : i32
    %c0_i32_0 = arith.constant 0 : i32
    return %arg0, %c0_i32 : i32, i32
  }
  func.func @transform_1(%arg0: i32) -> (i32, i32) {
    %c0_i32 = arith.constant 0 : i32
    %c0_i32_0 = arith.constant 0 : i32
    return %arg0, %c0_i32 : i32, i32
  }
  func.func @transform_2(%arg0: i32) -> (i32, i32) {
    %c0_i32 = arith.constant 0 : i32
    %c0_i32_0 = arith.constant 0 : i32
    return %arg0, %c0_i32 : i32, i32
  }
}

</mosaic_0001>

<bundles_post_ra>
// kernel: positional_encoding_forward.1
= control target key start
LH: loop header
LB: loop body
LE: loop exit
PB: predicated region body
PF: predicated region fallthrough
CT: control target
= control target key end

     0   :  { %s27_s11 = smov 32   ;;  %vm16_vm0 = vcmask 261120   ;;  %vm20_vm1 = vcmask 523264   ;;  %s52_s1 = inlined_call_operand.vmem [shape: f32[8,32], index: 1, kind: input, shape index: {}]   ;;  %s53_s0 = inlined_call_operand.vmem [shape: f32[8,64], index: 0, kind: input, shape index: {}]   ;;  %s54_s2 = inlined_call_operand.vmem [shape: f32[8,64], index: 2, kind: output, shape index: {}]  }
   0x1   :  { %v11_v0 = vld [vmem:[%s52_s1] sm:$0xff] }
   0x2   :  { %13 = vrot.lane.b32.xlu0 %v11_v0, %s27_s11  ;;  %v18_v1 = vld [vmem:[%s53_s0] sm:$0xff] }
  0x74   :  { %v14_v2 = vpop.permute.xlu0 %13 }
  0x75   :  { %v17_v3 = vsel %vm16_vm0, %v11_v0, %v14_v2 }
  0x76   :  { %v19_v4 = vadd.f32 %v18_v1, %v17_v3 }
  0x78   :  { %21 = vst.msk [vmem:[%s54_s2] sm:$0xff] %vm20_vm1, %v19_v4 }

</bundles_post_ra>
